<compile_context>
chip_gen: v7x
topology: tpu7x:2x2x1
jax: 0.10.0
libtpu: 0.0.40
codegen_flags: <defaults>
</compile_context>

<pallas_src>
import functools
import math

import jax
import jax.numpy as jnp
from jax import lax
from jax.experimental import pallas as pl
from jax.experimental.pallas import tpu as pltpu


# ----------------------------------------------------------------------------
# Fused MHA kernel: one invocation processes the whole (B*S, D) slab.
#   x:      (B*S, D)
#   wqkv:   (D, 3D)    (Q columns pre-scaled by 1/sqrt(d_k))
#   bqkv:   (1, 3D)
#   wo:     (D, D)
#   bo:     (1, D)
#   out:    (B*S, D)
#   ctx:    VMEM scratch (B*S, D) fp32  (head-concat slab)
# ----------------------------------------------------------------------------
def _mha_kernel(x_ref, wqkv_ref, bqkv_ref, wo_ref, bo_ref, o_ref, ctx_ref, *,
                batch, seq, num_heads, head_dim):
    D = num_heads * head_dim

    # Fused QKV projection: one (B*S, D) @ (D, 3D) MXU matmul, fp32 accumulate.
    x = x_ref[...]                                              # (B*S, D)
    qkv = jnp.dot(x, wqkv_ref[...], preferred_element_type=jnp.float32)
    qkv = qkv + bqkv_ref[...]                                   # (B*S, 3D)

    # Per-head attention, batched over the batch dim on the MXU; each head
    # writes its context directly into the VMEM ctx slab (implicit concat).
    for h in range(num_heads):
        lo = h * head_dim
        hi = lo + head_dim
        q = qkv[:, lo:hi].reshape(batch, seq, head_dim)         # pre-scaled
        k = qkv[:, D + lo:D + hi].reshape(batch, seq, head_dim)
        v = qkv[:, 2 * D + lo:2 * D + hi].reshape(batch, seq, head_dim)

        # scores = q @ k^T, batched over B, contracting the last dims of q and
        # k -- no transpose is materialized.
        s = lax.dot_general(q, k, (((2,), (2,)), ((0,), (0,))),
                            preferred_element_type=jnp.float32)  # (B, S, S)

        # Numerically stable softmax over the last axis (fp32 on VPU/EUP).
        s = s - jnp.max(s, axis=-1, keepdims=True)
        p = jnp.exp(s)
        p = p * pl.reciprocal(jnp.sum(p, axis=-1, keepdims=True), approx=True)
        # attn_drop: identity in eval mode.

        ctx = lax.dot_general(p, v, (((2,), (1,)), ((0,), (0,))),
                              preferred_element_type=jnp.float32)  # (B, S, d)
        ctx_ref[:, lo:hi] = ctx.reshape(batch * seq, head_dim)

    # Output projection on the lane-dense (B*S, D) slab; single wide store.
    out = jnp.dot(ctx_ref[...], wo_ref[...], preferred_element_type=jnp.float32)
    o_ref[...] = (out + bo_ref[...]).astype(o_ref.dtype)


# ----------------------------------------------------------------------------
# One-time parameter preparation (hoisted off the per-forward path):
# fuse Q/K/V weights into (D, 3D) and bake the attention scale into Q.
# ----------------------------------------------------------------------------
def prepare_mha_params(params, num_heads):
    D = params["wq"].shape[0]
    d_k = D // num_heads
    scale = 1.0 / math.sqrt(d_k)
    wqkv = jnp.concatenate(
        [params["wq"] * scale, params["wk"], params["wv"]], axis=1)
    bqkv = jnp.concatenate(
        [params["bq"] * scale, params["bk"], params["bv"]]).reshape(1, 3 * D)
    return {
        "wqkv": wqkv,
        "bqkv": bqkv,
        "wo": params["wo"],
        "bo": params["bo"].reshape(1, D),
    }


# ----------------------------------------------------------------------------
# Forward wrapper: single pallas_call, no grid (whole problem fits VMEM).
# ----------------------------------------------------------------------------
def multi_head_attention(x, fused, num_heads):
    B, S, D = x.shape
    d_k = D // num_heads

    kern = functools.partial(_mha_kernel, batch=B, seq=S,
                             num_heads=num_heads, head_dim=d_k)

    out = pl.pallas_call(
        kern,
        out_shape=jax.ShapeDtypeStruct((B * S, D), x.dtype),
        scratch_shapes=[pltpu.VMEM((B * S, D), jnp.float32)],
    )(x.reshape(B * S, D), fused["wqkv"], fused["bqkv"],
      fused["wo"], fused["bo"])
    return out.reshape(B, S, D)


# ----------------------------------------------------------------------------
# Pure-JAX reference (mirrors the PyTorch forward, eval mode)
# ----------------------------------------------------------------------------
def reference(x, params, num_heads):
    B, S, D = x.shape
    d_k = D // num_heads
    q = x @ params["wq"] + params["bq"]
    k = x @ params["wk"] + params["bk"]
    v = x @ params["wv"] + params["bv"]
    q = q.reshape(B, S, num_heads, d_k).transpose(0, 2, 1, 3)
    k = k.reshape(B, S, num_heads, d_k).transpose(0, 2, 3, 1)
    v = v.reshape(B, S, num_heads, d_k).transpose(0, 2, 1, 3)
    s = (q @ k) / math.sqrt(d_k)
    p = jax.nn.softmax(s, axis=-1)
    o = (p @ v).transpose(0, 2, 1, 3).reshape(B, S, D)
    return o @ params["wo"] + params["bo"]


if __name__ == "__main__":
    # Small shapes consistent with the module: (batch, num_image_tokens, dim)
    B, S, D, H = 2, 8, 32, 4

    key = jax.random.PRNGKey(0)
    ks = jax.random.split(key, 9)
    bound = 1.0 / math.sqrt(D)  # nn.Linear default init scale

    params = {
        "wq": jax.random.uniform(ks[0], (D, D), jnp.float32, -bound, bound),
        "bq": jax.random.uniform(ks[1], (D,), jnp.float32, -bound, bound),
        "wk": jax.random.uniform(ks[2], (D, D), jnp.float32, -bound, bound),
        "bk": jax.random.uniform(ks[3], (D,), jnp.float32, -bound, bound),
        "wv": jax.random.uniform(ks[4], (D, D), jnp.float32, -bound, bound),
        "bv": jax.random.uniform(ks[5], (D,), jnp.float32, -bound, bound),
        "wo": jax.random.uniform(ks[6], (D, D), jnp.float32, -bound, bound),
        "bo": jax.random.uniform(ks[7], (D,), jnp.float32, -bound, bound),
    }
    x = jax.random.normal(ks[8], (B, S, D), jnp.float32)

    # One-time parameter fusion (not on the per-forward critical path).
    fused = prepare_mha_params(params, H)
    fused = jax.tree_util.tree_map(jax.block_until_ready, fused)

    out = multi_head_attention(x, fused, H)
    out = jax.block_until_ready(out)

    ref = reference(x, params, H)
    assert out.shape == (B, S, D)
    # Slightly looser tolerance: pl.reciprocal(approx=True) (EUP) in the
    # softmax denominator has ~1e-4 relative error vs the exact reference.
    assert jnp.allclose(out, ref, atol=1e-3, rtol=1e-3), "mismatch vs reference"

    print("KERNEL_OK")
</pallas_src>

<mosaic_0001>
module attributes {stable_mosaic.version = 11 : i64} {
  func.func @_mha_kernel(%arg0: memref<16x32xf32, #tpu.memory_space<vmem>>, %arg1: memref<32x96xf32, #tpu.memory_space<vmem>>, %arg2: memref<1x96xf32, #tpu.memory_space<vmem>>, %arg3: memref<32x32xf32, #tpu.memory_space<vmem>>, %arg4: memref<1x32xf32, #tpu.memory_space<vmem>>, %arg5: memref<16x32xf32, #tpu.memory_space<vmem>>, %arg6: memref<16x32xf32, #tpu.memory_space<vmem>>) attributes {dimension_semantics = [], scalar_prefetch = 0 : i64, scratch_operands = 1 : i64, tpu.core_type = #tpu.core_type<tc>} {
    %c0 = arith.constant 0 : index
    %c0_0 = arith.constant 0 : index
    %0 = vector.load %arg0[%c0, %c0_0] : memref<16x32xf32, #tpu.memory_space<vmem>>, vector<16x32xf32>
    %c0_1 = arith.constant 0 : index
    %c0_2 = arith.constant 0 : index
    %1 = vector.load %arg1[%c0_1, %c0_2] : memref<32x96xf32, #tpu.memory_space<vmem>>, vector<32x96xf32>
    %cst = arith.constant dense<0.000000e+00> : vector<16x96xf32>
    %2 = tpu.matmul %0, %1, %cst {dimension_numbers = #tpu.dot_dimension_numbers<[1], [0], [0], [1], [0, 0, 1, 1], [], []>} : vector<16x32xf32>, vector<32x96xf32>, vector<16x96xf32> -> vector<16x96xf32>
    %c0_3 = arith.constant 0 : index
    %c0_4 = arith.constant 0 : index
    %3 = vector.load %arg2[%c0_3, %c0_4] : memref<1x96xf32, #tpu.memory_space<vmem>>, vector<1x96xf32>
    %4 = vector.broadcast %3 : vector<1x96xf32> to vector<16x96xf32>
    %5 = arith.addf %2, %4 : vector<16x96xf32>
    %6 = vector.extract_strided_slice %5 {offsets = [0, 0], sizes = [16, 8], strides = [1, 1]} : vector<16x96xf32> to vector<16x8xf32>
    %7 = vector.shape_cast %6 : vector<16x8xf32> to vector<2x8x8xf32>
    %8 = vector.extract_strided_slice %5 {offsets = [0, 32], sizes = [16, 8], strides = [1, 1]} : vector<16x96xf32> to vector<16x8xf32>
    %9 = vector.shape_cast %8 : vector<16x8xf32> to vector<2x8x8xf32>
    %10 = vector.extract_strided_slice %5 {offsets = [0, 64], sizes = [16, 8], strides = [1, 1]} : vector<16x96xf32> to vector<16x8xf32>
    %11 = vector.shape_cast %10 : vector<16x8xf32> to vector<2x8x8xf32>
    %cst_5 = arith.constant dense<0.000000e+00> : vector<2x8x8xf32>
    %12 = tpu.matmul %7, %9, %cst_5 {dimension_numbers = #tpu.dot_dimension_numbers<[2], [2], [1], [1], [0, 0, 0, 1, 1, 1], [0], [0]>} : vector<2x8x8xf32>, vector<2x8x8xf32>, vector<2x8x8xf32> -> vector<2x8x8xf32>
    %cst_6 = arith.constant dense<0xFF800000> : vector<2x8xf32>
    %13 = vector.multi_reduction <maximumf>, %12, %cst_6 [2] : vector<2x8x8xf32> to vector<2x8xf32>
    %14 = vector.shape_cast %13 : vector<2x8xf32> to vector<2x8x1xf32>
    %15 = vector.broadcast %14 : vector<2x8x1xf32> to vector<2x8x8xf32>
    %16 = arith.subf %12, %15 : vector<2x8x8xf32>
    %17 = math.exp %16 : vector<2x8x8xf32>
    %cst_7 = arith.constant dense<0.000000e+00> : vector<2x8xf32>
    %18 = vector.multi_reduction <add>, %17, %cst_7 [2] : vector<2x8x8xf32> to vector<2x8xf32>
    %19 = vector.shape_cast %18 : vector<2x8xf32> to vector<2x8x1xf32>
    %20 = tpu.reciprocal %19 {approx = true} : vector<2x8x1xf32> -> vector<2x8x1xf32>
    %21 = vector.broadcast %20 : vector<2x8x1xf32> to vector<2x8x8xf32>
    %22 = arith.mulf %17, %21 : vector<2x8x8xf32>
    %cst_8 = arith.constant dense<0.000000e+00> : vector<2x8x8xf32>
    %23 = tpu.matmul %22, %11, %cst_8 {dimension_numbers = #tpu.dot_dimension_numbers<[2], [1], [1], [2], [0, 0, 0, 1, 1, 2], [0], [0]>} : vector<2x8x8xf32>, vector<2x8x8xf32>, vector<2x8x8xf32> -> vector<2x8x8xf32>
    %24 = vector.shape_cast %23 : vector<2x8x8xf32> to vector<16x8xf32>
    %c0_9 = arith.constant 0 : index
    %c0_10 = arith.constant 0 : index
    %25 = vector.load %arg6[%c0_9, %c0_10] : memref<16x32xf32, #tpu.memory_space<vmem>>, vector<16x8xf32>
    tpu.vector_store %arg6[%c0_9, %c0_10], %24 {strides = array<i32>} : memref<16x32xf32, #tpu.memory_space<vmem>>, vector<16x8xf32>,
    %26 = vector.extract_strided_slice %5 {offsets = [0, 8], sizes = [16, 8], strides = [1, 1]} : vector<16x96xf32> to vector<16x8xf32>
    %27 = vector.shape_cast %26 : vector<16x8xf32> to vector<2x8x8xf32>
    %28 = vector.extract_strided_slice %5 {offsets = [0, 40], sizes = [16, 8], strides = [1, 1]} : vector<16x96xf32> to vector<16x8xf32>
    %29 = vector.shape_cast %28 : vector<16x8xf32> to vector<2x8x8xf32>
    %30 = vector.extract_strided_slice %5 {offsets = [0, 72], sizes = [16, 8], strides = [1, 1]} : vector<16x96xf32> to vector<16x8xf32>
    %31 = vector.shape_cast %30 : vector<16x8xf32> to vector<2x8x8xf32>
    %cst_11 = arith.constant dense<0.000000e+00> : vector<2x8x8xf32>
    %32 = tpu.matmul %27, %29, %cst_11 {dimension_numbers = #tpu.dot_dimension_numbers<[2], [2], [1], [1], [0, 0, 0, 1, 1, 1], [0], [0]>} : vector<2x8x8xf32>, vector<2x8x8xf32>, vector<2x8x8xf32> -> vector<2x8x8xf32>
    %cst_12 = arith.constant dense<0xFF800000> : vector<2x8xf32>
    %33 = vector.multi_reduction <maximumf>, %32, %cst_12 [2] : vector<2x8x8xf32> to vector<2x8xf32>
    %34 = vector.shape_cast %33 : vector<2x8xf32> to vector<2x8x1xf32>
    %35 = vector.broadcast %34 : vector<2x8x1xf32> to vector<2x8x8xf32>
    %36 = arith.subf %32, %35 : vector<2x8x8xf32>
    %37 = math.exp %36 : vector<2x8x8xf32>
    %cst_13 = arith.constant dense<0.000000e+00> : vector<2x8xf32>
    %38 = vector.multi_reduction <add>, %37, %cst_13 [2] : vector<2x8x8xf32> to vector<2x8xf32>
    %39 = vector.shape_cast %38 : vector<2x8xf32> to vector<2x8x1xf32>
    %40 = tpu.reciprocal %39 {approx = true} : vector<2x8x1xf32> -> vector<2x8x1xf32>
    %41 = vector.broadcast %40 : vector<2x8x1xf32> to vector<2x8x8xf32>
    %42 = arith.mulf %37, %41 : vector<2x8x8xf32>
    %cst_14 = arith.constant dense<0.000000e+00> : vector<2x8x8xf32>
    %43 = tpu.matmul %42, %31, %cst_14 {dimension_numbers = #tpu.dot_dimension_numbers<[2], [1], [1], [2], [0, 0, 0, 1, 1, 2], [0], [0]>} : vector<2x8x8xf32>, vector<2x8x8xf32>, vector<2x8x8xf32> -> vector<2x8x8xf32>
    %44 = vector.shape_cast %43 : vector<2x8x8xf32> to vector<16x8xf32>
    %c0_15 = arith.constant 0 : index
    %c8 = arith.constant 8 : index
    %45 = vector.load %arg6[%c0_15, %c8] : memref<16x32xf32, #tpu.memory_space<vmem>>, vector<16x8xf32>
    tpu.vector_store %arg6[%c0_15, %c8], %44 {strides = array<i32>} : memref<16x32xf32, #tpu.memory_space<vmem>>, vector<16x8xf32>,
    %46 = vector.extract_strided_slice %5 {offsets = [0, 16], sizes = [16, 8], strides = [1, 1]} : vector<16x96xf32> to vector<16x8xf32>
    %47 = vector.shape_cast %46 : vector<16x8xf32> to vector<2x8x8xf32>
    %48 = vector.extract_strided_slice %5 {offsets = [0, 48], sizes = [16, 8], strides = [1, 1]} : vector<16x96xf32> to vector<16x8xf32>
    %49 = vector.shape_cast %48 : vector<16x8xf32> to vector<2x8x8xf32>
    %50 = vector.extract_strided_slice %5 {offsets = [0, 80], sizes = [16, 8], strides = [1, 1]} : vector<16x96xf32> to vector<16x8xf32>
    %51 = vector.shape_cast %50 : vector<16x8xf32> to vector<2x8x8xf32>
    %cst_16 = arith.constant dense<0.000000e+00> : vector<2x8x8xf32>
    %52 = tpu.matmul %47, %49, %cst_16 {dimension_numbers = #tpu.dot_dimension_numbers<[2], [2], [1], [1], [0, 0, 0, 1, 1, 1], [0], [0]>} : vector<2x8x8xf32>, vector<2x8x8xf32>, vector<2x8x8xf32> -> vector<2x8x8xf32>
    %cst_17 = arith.constant dense<0xFF800000> : vector<2x8xf32>
    %53 = vector.multi_reduction <maximumf>, %52, %cst_17 [2] : vector<2x8x8xf32> to vector<2x8xf32>
    %54 = vector.shape_cast %53 : vector<2x8xf32> to vector<2x8x1xf32>
    %55 = vector.broadcast %54 : vector<2x8x1xf32> to vector<2x8x8xf32>
    %56 = arith.subf %52, %55 : vector<2x8x8xf32>
    %57 = math.exp %56 : vector<2x8x8xf32>
    %cst_18 = arith.constant dense<0.000000e+00> : vector<2x8xf32>
    %58 = vector.multi_reduction <add>, %57, %cst_18 [2] : vector<2x8x8xf32> to vector<2x8xf32>
    %59 = vector.shape_cast %58 : vector<2x8xf32> to vector<2x8x1xf32>
    %60 = tpu.reciprocal %59 {approx = true} : vector<2x8x1xf32> -> vector<2x8x1xf32>
    %61 = vector.broadcast %60 : vector<2x8x1xf32> to vector<2x8x8xf32>
    %62 = arith.mulf %57, %61 : vector<2x8x8xf32>
    %cst_19 = arith.constant dense<0.000000e+00> : vector<2x8x8xf32>
    %63 = tpu.matmul %62, %51, %cst_19 {dimension_numbers = #tpu.dot_dimension_numbers<[2], [1], [1], [2], [0, 0, 0, 1, 1, 2], [0], [0]>} : vector<2x8x8xf32>, vector<2x8x8xf32>, vector<2x8x8xf32> -> vector<2x8x8xf32>
    %64 = vector.shape_cast %63 : vector<2x8x8xf32> to vector<16x8xf32>
    %c0_20 = arith.constant 0 : index
    %c16 = arith.constant 16 : index
    %65 = vector.load %arg6[%c0_20, %c16] : memref<16x32xf32, #tpu.memory_space<vmem>>, vector<16x8xf32>
    tpu.vector_store %arg6[%c0_20, %c16], %64 {strides = array<i32>} : memref<16x32xf32, #tpu.memory_space<vmem>>, vector<16x8xf32>,
    %66 = vector.extract_strided_slice %5 {offsets = [0, 24], sizes = [16, 8], strides = [1, 1]} : vector<16x96xf32> to vector<16x8xf32>
    %67 = vector.shape_cast %66 : vector<16x8xf32> to vector<2x8x8xf32>
    %68 = vector.extract_strided_slice %5 {offsets = [0, 56], sizes = [16, 8], strides = [1, 1]} : vector<16x96xf32> to vector<16x8xf32>
    %69 = vector.shape_cast %68 : vector<16x8xf32> to vector<2x8x8xf32>
    %70 = vector.extract_strided_slice %5 {offsets = [0, 88], sizes = [16, 8], strides = [1, 1]} : vector<16x96xf32> to vector<16x8xf32>
    %71 = vector.shape_cast %70 : vector<16x8xf32> to vector<2x8x8xf32>
    %cst_21 = arith.constant dense<0.000000e+00> : vector<2x8x8xf32>
    %72 = tpu.matmul %67, %69, %cst_21 {dimension_numbers = #tpu.dot_dimension_numbers<[2], [2], [1], [1], [0, 0, 0, 1, 1, 1], [0], [0]>} : vector<2x8x8xf32>, vector<2x8x8xf32>, vector<2x8x8xf32> -> vector<2x8x8xf32>
    %cst_22 = arith.constant dense<0xFF800000> : vector<2x8xf32>
    %73 = vector.multi_reduction <maximumf>, %72, %cst_22 [2] : vector<2x8x8xf32> to vector<2x8xf32>
    %74 = vector.shape_cast %73 : vector<2x8xf32> to vector<2x8x1xf32>
    %75 = vector.broadcast %74 : vector<2x8x1xf32> to vector<2x8x8xf32>
    %76 = arith.subf %72, %75 : vector<2x8x8xf32>
    %77 = math.exp %76 : vector<2x8x8xf32>
    %cst_23 = arith.constant dense<0.000000e+00> : vector<2x8xf32>
    %78 = vector.multi_reduction <add>, %77, %cst_23 [2] : vector<2x8x8xf32> to vector<2x8xf32>
    %79 = vector.shape_cast %78 : vector<2x8xf32> to vector<2x8x1xf32>
    %80 = tpu.reciprocal %79 {approx = true} : vector<2x8x1xf32> -> vector<2x8x1xf32>
    %81 = vector.broadcast %80 : vector<2x8x1xf32> to vector<2x8x8xf32>
    %82 = arith.mulf %77, %81 : vector<2x8x8xf32>
    %cst_24 = arith.constant dense<0.000000e+00> : vector<2x8x8xf32>
    %83 = tpu.matmul %82, %71, %cst_24 {dimension_numbers = #tpu.dot_dimension_numbers<[2], [1], [1], [2], [0, 0, 0, 1, 1, 2], [0], [0]>} : vector<2x8x8xf32>, vector<2x8x8xf32>, vector<2x8x8xf32> -> vector<2x8x8xf32>
    %84 = vector.shape_cast %83 : vector<2x8x8xf32> to vector<16x8xf32>
    %c0_25 = arith.constant 0 : index
    %c24 = arith.constant 24 : index
    %85 = vector.load %arg6[%c0_25, %c24] : memref<16x32xf32, #tpu.memory_space<vmem>>, vector<16x8xf32>
    tpu.vector_store %arg6[%c0_25, %c24], %84 {strides = array<i32>} : memref<16x32xf32, #tpu.memory_space<vmem>>, vector<16x8xf32>,
    %c0_26 = arith.constant 0 : index
    %c0_27 = arith.constant 0 : index
    %86 = vector.load %arg6[%c0_26, %c0_27] : memref<16x32xf32, #tpu.memory_space<vmem>>, vector<16x32xf32>
    %c0_28 = arith.constant 0 : index
    %c0_29 = arith.constant 0 : index
    %87 = vector.load %arg3[%c0_28, %c0_29] : memref<32x32xf32, #tpu.memory_space<vmem>>, vector<32x32xf32>
    %cst_30 = arith.constant dense<0.000000e+00> : vector<16x32xf32>
    %88 = tpu.matmul %86, %87, %cst_30 {dimension_numbers = #tpu.dot_dimension_numbers<[1], [0], [0], [1], [0, 0, 1, 1], [], []>} : vector<16x32xf32>, vector<32x32xf32>, vector<16x32xf32> -> vector<16x32xf32>
    %c0_31 = arith.constant 0 : index
    %c0_32 = arith.constant 0 : index
    %89 = vector.load %arg4[%c0_31, %c0_32] : memref<1x32xf32, #tpu.memory_space<vmem>>, vector<1x32xf32>
    %90 = vector.broadcast %89 : vector<1x32xf32> to vector<16x32xf32>
    %91 = arith.addf %88, %90 : vector<16x32xf32>
    %c0_33 = arith.constant 0 : index
    %c0_34 = arith.constant 0 : index
    %92 = vector.load %arg5[%c0_33, %c0_34] : memref<16x32xf32, #tpu.memory_space<vmem>>, vector<16x32xf32>
    tpu.vector_store %arg5[%c0_33, %c0_34], %91 {strides = array<i32>} : memref<16x32xf32, #tpu.memory_space<vmem>>, vector<16x32xf32>,
    return
  }
}

</mosaic_0001>

<bundles_post_ra>
// kernel: tpu_custom_call.1
= control target key start
LH: loop header
LB: loop body
LE: loop exit
PB: predicated region body
PF: predicated region fallthrough
CT: control target
= control target key end

     0   :  { %10 = vsyncpa [#allocation4], 0  ;;  %s2222_s0 = inlined_call_operand.hbm [shape: f32[16,32], index: 0, kind: input, shape index: {}]   ;;  %s2223_s1 = inlined_call_operand.hbm [shape: f32[32,96], index: 1, kind: input, shape index: {}]   ;;  %s2224_s2 = inlined_call_operand.vmem [shape: f32[1,96], index: 2, kind: input, shape index: {}]   ;;  %s2225_s3 = inlined_call_operand.hbm [shape: f32[32,32], index: 3, kind: input, shape index: {}]   ;;  %s2226_s4 = inlined_call_operand.vmem [shape: f32[1,32], index: 4, kind: input, shape index: {}]   ;;  %s2227_s5 = inlined_call_operand.hbm [shape: f32[16,32], index: 5, kind: output, shape index: {}]  }
   0x1   :  { %11 = vsyncpa [#allocation7], 0 }
   0x2   :  { %12 = vsyncpa [#allocation5], 0  ;;  %s1964_s18 = smov [#allocation6]   ;;  %s1965_s20 = smov [#allocation3]  }
   0x3   :  { %s30_s19 = sshll.u32 %s1964_s18, 4  ;;  %s18_s21 = sshll.u32 %s1965_s20, 4  ;;  %s31_s19 = int_to_ptr.vmem [resolvable:$true] %s30_s19  ;;  %s2015_s21 = int_to_ptr.vmem [resolvable:$true] %s18_s21 }
   0x4   :  { %s1870_s24 = scalar_lea.hbm %s2223_s1, 512 }
   0x5   :  { %p1871_p0 = scmp.ne.s32.totalorder %s2223_s1, %s1870_s24  ;;  %p1874_p1 = scmp.lt.u32.totalorder %s1870_s24, %s2223_s1 }
   0x7   :  { %p1876_p2 = pnand %p1874_p1, %p1871_p0 }
   0x9   :  { %1879 = shalt.err (!%p1876_p2)
}
   0xa   :  { %s1880_s29 = scalar_lea.vmem %s31_s19, 512  ;;  %p1885_p4 = scmp.lt.s32.totalorder %s31_s19, %s31_s19 }
   0xb   :  { %p1881_p3 = scmp.ne.s32.totalorder %s31_s19, %s1880_s29  ;;  %p1886_p5 = scmp.lt.s32.totalorder %s1880_s29, %s1880_s29 }
   0xd   :  { %p1887_p6 = por %p1886_p5, %p1885_p4 }
   0xf   :  { %p1888_p7 = pnand %p1887_p6, %p1881_p3 }
  0x11   :  { %1891 = shalt.err (!%p1888_p7)
}
  0x12   :  { %s1966_s30 = smov 128   ;;  %s1967_s6 = smov 8  }
  0x13   :  { %36 = dma.hbm_to_vmem [thread:$0]  %s2223_s1, 512, %s31_s19, [#allocation7], %s1966_s30, %s1966_s30, %s1967_s6  }
  0x14   :  { %s1892_s11 = scalar_lea.hbm %s2222_s0, 256 }
  0x15   :  { %p1893_p8 = scmp.ne.s32.totalorder %s2222_s0, %s1892_s11  ;;  %p1896_p9 = scmp.lt.u32.totalorder %s1892_s11, %s2222_s0 }
  0x17   :  { %p1898_p10 = pnand %p1896_p9, %p1893_p8 }
  0x19   :  { %1901 = shalt.err (!%p1898_p10)
}
  0x1a   :  { %s1902_s16 = scalar_lea.vmem %s2015_s21, 256  ;;  %p1907_p12 = scmp.lt.s32.totalorder %s2015_s21, %s2015_s21 }
  0x1b   :  { %p1903_p11 = scmp.ne.s32.totalorder %s2015_s21, %s1902_s16  ;;  %p1908_p13 = scmp.lt.s32.totalorder %s1902_s16, %s1902_s16 }
  0x1d   :  { %p1909_p0 = por %p1908_p13, %p1907_p12 }
  0x1f   :  { %p1910_p1 = pnand %p1909_p0, %p1903_p11 }
  0x21   :  { %1913 = shalt.err (!%p1910_p1)
}
  0x22   :  { %24 = dma.hbm_to_vmem [thread:$0]  %s2222_s0, 256, %s2015_s21, [#allocation4], %s1966_s30, %s1966_s30, %s1967_s6  }
  0x23   :  { %s1968_s18 = smov [#allocation8]   ;;  %s1914_s23 = scalar_lea.hbm %s2225_s3, 512 }
  0x24   :  { %s44_s19 = sshll.u32 %s1968_s18, 4  ;;  %p1915_p2 = scmp.ne.s32.totalorder %s2225_s3, %s1914_s23  ;;  %s45_s19 = int_to_ptr.vmem [resolvable:$true] %s44_s19 }
  0x25   :  { %p1918_p3 = scmp.lt.u32.totalorder %s1914_s23, %s2225_s3 }
  0x27   :  { %p1920_p4 = pnand %p1918_p3, %p1915_p2 }
  0x29   :  { %1923 = shalt.err (!%p1920_p4)
}
  0x2a   :  { %s1924_s28 = scalar_lea.vmem %s45_s19, 512  ;;  %p1929_p6 = scmp.lt.s32.totalorder %s45_s19, %s45_s19 }
  0x2b   :  { %p1925_p5 = scmp.ne.s32.totalorder %s45_s19, %s1924_s28  ;;  %p1930_p7 = scmp.lt.s32.totalorder %s1924_s28, %s1924_s28 }
  0x2d   :  { %p1931_p8 = por %p1930_p7, %p1929_p6 }
  0x2f   :  { %p1932_p9 = pnand %p1931_p8, %p1925_p5 }
  0x31   :  { %1935 = shalt.err (!%p1932_p9)
}
  0x32   :  { %50 = dma.hbm_to_vmem [thread:$0]  %s2225_s3, 512, %s45_s19, [#allocation7], %s1966_s30, %s1966_s30, %s1967_s6  }
  0x33   :  { %1958 = dma.done.wait [#allocation4], 256  }
  0x34   :  { %1959 = vsyncadd [#allocation4], 4294967040 }
  0x35   :  { %1960 = dma.done.wait [#allocation7], 1024  }
  0x36   :  { %1961 = vsyncadd [#allocation7], 4294966272  ;;  %vm75_vm0 = vcmask 261120   ;;  %v64_v0 = vld [vmem:[#allocation6] sm:$0xff]  ;;  %v65_v1 = vld [vmem:[#allocation6 + $0x8] sm:$0xff]  ;;  %v1969_v8 = vmov 0.0  }
  0x37   :  { %v66_v2 = vld [vmem:[#allocation6 + $0x10] sm:$0xff]  ;;  %v1801_v3 = vpack.c.bf16 %v65_v1, %v64_v0  ;;  %v67_v4 = vld [vmem:[#allocation6 + $0x18] sm:$0xff]  ;;  %1710 = vmatprep.subr.mxu1 %v1969_v8  ;;  %vm1970_vm1 = vmmov 0   ;;  %v1625_v9 = vld [vmem:[%s2224_s2] ss:$0 sm:$0xff]  ;;  %s1971_s7 = smov 96  }
  0x38   :  { %v62_v5 = vld [vmem:[#allocation3] sm:$0xff]  ;;  %v1805_v6 = vpack.c.bf16 %v67_v4, %v66_v2  ;;  %v63_v7 = vld [vmem:[#allocation3 + $0x8] sm:$0xff]  ;;  %1712 = vmatprep.mubr.msk.f32.mxu1 %vm1970_vm1, %v1969_v8  ;;  %vm160_vm2 = vcmask 64512   ;;  %s1972_s2 = smov 64   ;;  %s1973_s8 = smov 88   ;;  %vm826_vm3 = vcmask 130112  }
  0x39   :  { %1707 = vmatprep.mubr.msk.f32.mxu0 %vm75_vm0, %v62_v5  ;;  %1802 = vmatprep.subr.bf16.mxu0 %v1801_v3  ;;  %s1974_s9 = smov 120   ;;  %s1975_s10 = smov 56   ;;  %vm1167_vm4 = vcmask 195712   ;;  %vm1508_vm5 = vcmask 261312  }
  0x3a   :  { %1804 = vmatpush3.bf16.msra.mxu0 %v1801_v3  ;;  %s1976_s11 = smov 112   ;;  %s1977_s12 = smov 80  }
  0x3b   :  { %1806 = vmatprep.subr.bf16.mxu0 %v1805_v6  ;;  %s1978_s13 = smov 48   ;;  %s1979_s14 = smov 72  }
  0x3c   :  { %s1980_s15 = smov 104   ;;  %s1981_s16 = smov 40  }
  0x3d   :  { %s1982_s1 = smov 16   ;;  %s1983_s17 = smov 24  }
  0x3e   :  { %1808 = vmatpush3.bf16.msra.mxu0 %v1805_v6  ;;  %s1984_s20 = smov [#allocation9]  }
  0x3f   :  { %1730 = vmatprep.subr.mxu0 %v1969_v8  ;;  %s1612_s22 = sshll.u32 %s1984_s20, 4  ;;  %s1613_s22 = int_to_ptr.vmem [resolvable:$true] %s1612_s22 }
  0x40   :  { %s1936_s23 = scalar_lea.vmem %s1613_s22, 256  ;;  %p1941_p11 = scmp.lt.s32.totalorder %s1613_s22, %s1613_s22 }
  0x41   :  { %1708 = vmatmul.mubr.msk.f32.vlgmr.msra.gmra.mrb[0].mxu0 %vm75_vm0, %v63_v7  ;;  %p1937_p10 = scmp.ne.s32.totalorder %s1613_s22, %s1936_s23  ;;  %p1942_p12 = scmp.lt.s32.totalorder %s1936_s23, %s1936_s23 }
  0x42   :  { %1732 = vmatprep.mubr.msk.f32.mxu0 %vm1970_vm1, %v1969_v8 }
  0x43   :  { %p1943_p13 = por %p1942_p12, %p1941_p11 }
  0x45   :  { %p1944_p0 = pnand %p1943_p13, %p1937_p10 }
 0x114   :  { %v1709_v10 = vpop.f32.mrb[0].mxu0 }
 0x115   :  { %v148_v11 = vpop.f32.mrb[1].mxu0  ;;  %v2081_v13 = vadd.f32 %v1709_v10, %v1625_v9 }
 0x116   :  { %v2078_v12 = vadd.f32 %v1625_v9, %v148_v11 }
 0x118   :  { %158 = vrot.lane.b32.xlu0 %v2078_v12, %s1971_s7 }
 0x11c   :  { %236 = vrot.lane.b32.xlu0 %v2081_v13, %s1971_s7 }
 0x18a   :  { %v159_v14 = vpop.permute.xlu0 %158 }
 0x18b   :  { %1711 = vmatpush3.xpose.msk.msra.mxu1 %vm160_vm2, %v159_v14 }
 0x18c   :  { %1715 = vmatprep.subr.mxu1 %v1969_v8 }
 0x18e   :  { %1713 = vmatmul.mubr.msk.f32.vlgmr.msra.gmra.mrb[0].mxu1 %vm160_vm2, %v2078_v12  ;;  %v237_v15 = vpop.permute.xlu0 %236 }
 0x18f   :  { %1716 = vmatpush3.xpose.msk.msra.mxu1 %vm160_vm2, %v237_v15  ;;  %1717 = vmatprep.mubr.msk.f32.mxu1 %vm1970_vm1, %v1969_v8 }
 0x190   :  { %1720 = vmatprep.subr.mxu1 %v1969_v8 }
 0x192   :  { %1718 = vmatmul.mubr.msk.f32.vlgmr.msra.gmra.mrb[2].mxu1 %vm160_vm2, %v2081_v13 }
 0x193   :  { %1722 = vmatprep.mubr.msk.f32.mxu1 %vm1970_vm1, %v1969_v8 }
 0x261   :  { %v231_v16 = vpop.f32.mrb[0].mxu1 }
 0x262   :  { %v1714_v17 = vpop.f32.mrb[1].mxu1  ;;  %v312_v18 = vsel %vm160_vm2, %v231_v16, -inf }
 0x263   :  { %313 = vmax.xlane.f32.xlu1 %v312_v18 }
 0x265   :  { %v308_v19 = vpop.f32.mrb[2].mxu1 }
 0x266   :  { %v1719_v20 = vpop.f32.mrb[3].mxu1  ;;  %v315_v21 = vsel %vm160_vm2, %v308_v19, -inf }
 0x267   :  { %316 = vmax.xlane.f32.xlu1 %v315_v21 }
 0x278   :  { %334 = vrot.lane.b32.xlu1 %v2078_v12, %s1972_s2 }
 0x27c   :  { %410 = vrot.lane.b32.xlu1 %v2081_v13, %s1972_s2 }
 0x280   :  { %490 = vrot.lane.b32.xlu1 %v2078_v12, %s1973_s8 }
 0x284   :  { %568 = vrot.lane.b32.xlu1 %v2081_v13, %s1973_s8 }
 0x2f0   :  { %v314_v22 = vpop.xlane.xlu1 %313 }
 0x2f1   :  { %v318_v23 = vsub.f32 %v231_v16, %v314_v22 }
 0x2f3   :  { %v320_v24 = vmul.f32 1.442695, %v318_v23 }
 0x2f4   :  { %v317_v25 = vpop.xlane.xlu1 %316 }
 0x2f5   :  { %1838 = vpow2.f32 %v320_v24  ;;  %v319_v26 = vsub.f32 %v308_v19, %v317_v25 }
 0x2f7   :  { %v322_v27 = vmul.f32 1.442695, %v319_v26 }
 0x2f8   :  { %v335_v28 = vpop.permute.xlu1 %334 }
 0x2f9   :  { %1840 = vpow2.f32 %v322_v27  ;;  %1721 = vmatpush3.msra.mxu1 %v335_v28 }
 0x2fa   :  { %1725 = vmatprep.subr.mxu1 %v1969_v8 }
 0x2fc   :  { %v411_v29 = vpop.permute.xlu1 %410 }
 0x2ff   :  { %v1839_v30 = vpop.eup %1838 }
 0x300   :  { %v491_v31 = vpop.permute.xlu1 %490  ;;  %v324_v32 = vsel %vm160_vm2, %v1839_v30, 0.0 }
 0x301   :  { %325 = vadd.xlane.f32.xlu0 %v324_v32  ;;  %1731 = vmatpush3.xpose.msk.msra.mxu0 %vm160_vm2, %v491_v31 }
 0x302   :  { %1740 = vmatprep.subr.mxu0 %v1969_v8 }
 0x303   :  { %v1841_v33 = vpop.eup %1840 }
 0x304   :  { %v327_v34 = vsel %vm160_vm2, %v1841_v33, 0.0  ;;  %v569_v35 = vpop.permute.xlu1 %568 }
 0x305   :  { %328 = vadd.xlane.f32.xlu1 %v327_v34 }
 0x316   :  { %566 = vrot.lane.b32.xlu1 %v2081_v13, %s1974_s9 }
 0x317   :  { %488 = vrot.lane.b32.xlu0 %v2078_v12, %s1974_s9 }
 0x38e   :  { %v326_v36 = vpop.xlane.xlu0 %325 }
 0x38f   :  { %1842 = vrcp.f32 %v326_v36 }
 0x392   :  { %v329_v37 = vpop.xlane.xlu1 %328  ;;  %v489_v38 = vpop.permute.xlu0 %488 }
 0x393   :  { %1844 = vrcp.f32 %v329_v37  ;;  %1733 = vmatmul.mubr.msk.f32.vlgmr.msra.gmra.mrb[2].mxu0 %vm160_vm2, %v489_v38 }
 0x394   :  { %1742 = vmatprep.mubr.msk.f32.mxu0 %vm1970_vm1, %v1969_v8 }
 0x396   :  { %v567_v43 = vpop.permute.xlu1 %566 }
 0x399   :  { %v1843_v39 = vpop.eup %1842 }
 0x39a   :  { %v332_v40 = vmul.f32 %v1843_v39, %v1839_v30 }
 0x39c   :  { %1723 = vmatmul.mubr.msk.f32.vlgmr.msra.gmra.mrb[4].mxu1 %vm160_vm2, %v332_v40 }
 0x39d   :  { %v1845_v41 = vpop.eup %1844  ;;  %1726 = vmatpush3.msra.mxu1 %v411_v29  ;;  %1727 = vmatprep.mubr.msk.f32.mxu1 %vm1970_vm1, %v1969_v8 }
 0x39e   :  { %v333_v42 = vmul.f32 %v1845_v41, %v1841_v33  ;;  %1735 = vmatprep.subr.mxu1 %v1969_v8 }
 0x3a0   :  { %1728 = vmatmul.mubr.msk.f32.vlgmr.msra.gmra.mrb[6].mxu1 %vm160_vm2, %v333_v42 }
 0x3a1   :  { %1737 = vmatprep.mubr.msk.f32.mxu1 %vm1970_vm1, %v1969_v8 }
 0x3a4   :  { %1736 = vmatpush3.xpose.msk.msra.mxu1 %vm160_vm2, %v569_v35 }
 0x3a5   :  { %1745 = vmatprep.subr.mxu1 %v1969_v8 }
 0x3a7   :  { %1738 = vmatmul.mubr.msk.f32.vlgmr.msra.gmra.mrb[8].mxu1 %vm160_vm2, %v567_v43 }
 0x3a8   :  { %1747 = vmatprep.mubr.msk.f32.mxu1 %vm1970_vm1, %v1969_v8 }
 0x466   :  { %v562_v44 = vpop.f32.mrb[2].mxu0 }
 0x467   :  { %v1734_v45 = vpop.f32.mrb[3].mxu0  ;;  %v644_v46 = vsel %vm160_vm2, %v562_v44, -inf }
 0x468   :  { %645 = vmax.xlane.f32.xlu1 %v644_v46 }
 0x46f   :  { %v406_v47 = vpop.f32.mrb[4].mxu1 }
 0x470   :  { %486 = vst.msk [vmem:[#allocation2] sm:$0xff] %vm160_vm2, %v406_v47  ;;  %v1724_v48 = vpop.f32.mrb[5].mxu1 }
 0x473   :  { %v482_v49 = vpop.f32.mrb[6].mxu1 }
 0x474   :  { %487 = vst.msk [vmem:[#allocation2 + $0x8] sm:$0xff] %vm160_vm2, %v482_v49  ;;  %v1729_v50 = vpop.f32.mrb[7].mxu1 }
 0x47a   :  { %v640_v51 = vpop.f32.mrb[8].mxu1 }
 0x47b   :  { %v1739_v52 = vpop.f32.mrb[9].mxu1  ;;  %v647_v53 = vsel %vm160_vm2, %v640_v51, -inf }
 0x47c   :  { %648 = vmax.xlane.f32.xlu0 %v647_v53 }
 0x492   :  { %742 = vrot.lane.b32.xlu0 %v2081_v13, %s1975_s10 }
 0x496   :  { %829 = vrot.lane.b32.xlu0 %v2078_v12, %s1976_s11 }
 0x4f5   :  { %v646_v54 = vpop.xlane.xlu1 %645 }
 0x4f6   :  { %v650_v55 = vsub.f32 %v562_v44, %v646_v54 }
 0x4f8   :  { %v652_v56 = vmul.f32 1.442695, %v650_v55 }
 0x4fa   :  { %1846 = vpow2.f32 %v652_v56 }
 0x504   :  { %v1847_v57 = vpop.eup %1846 }
 0x505   :  { %v656_v58 = vsel %vm160_vm2, %v1847_v57, 0.0 }
 0x506   :  { %657 = vadd.xlane.f32.xlu1 %v656_v58 }
 0x509   :  { %v649_v59 = vpop.xlane.xlu0 %648 }
 0x50a   :  { %v651_v61 = vsub.f32 %v640_v51, %v649_v59 }
 0x50c   :  { %v654_v62 = vmul.f32 1.442695, %v651_v61 }
 0x50d   :  { %v743_v60 = vpop.permute.xlu0 %742 }
 0x50e   :  { %1746 = vmatpush3.msra.mxu1 %v743_v60  ;;  %1848 = vpow2.f32 %v654_v62 }
 0x50f   :  { %1755 = vmatprep.subr.mxu1 %v1969_v8 }
 0x511   :  { %v830_v6 = vpop.permute.xlu0 %829 }
 0x517   :  { %666 = vrot.lane.b32.xlu1 %v2078_v12, %s1975_s10 }
 0x518   :  { %v1849_v63 = vpop.eup %1848 }
 0x519   :  { %v659_v0 = vsel %vm160_vm2, %v1849_v63, 0.0 }
 0x51b   :  { %831 = vrot.lane.b32.xlu1 %v2078_v12, %s1977_s12 }
 0x51f   :  { %909 = vrot.lane.b32.xlu1 %v2081_v13, %s1977_s12 }
 0x543   :  { %660 = vadd.xlane.f32.xlu1 %v659_v0 }
 0x554   :  { %907 = vrot.lane.b32.xlu1 %v2081_v13, %s1976_s11 }
 0x593   :  { %v658_v1 = vpop.xlane.xlu1 %657 }
 0x594   :  { %1850 = vrcp.f32 %v658_v1 }
 0x597   :  { %v667_v2 = vpop.permute.xlu1 %666 }
 0x598   :  { %1741 = vmatpush3.msra.mxu0 %v667_v2 }
 0x599   :  { %1750 = vmatprep.subr.mxu0 %v1969_v8 }
 0x59b   :  { %v832_v5 = vpop.permute.xlu1 %831 }
 0x59e   :  { %v1851_v3 = vpop.eup %1850 }
 0x59f   :  { %v664_v4 = vmul.f32 %v1851_v3, %v1847_v57  ;;  %v910_v7 = vpop.permute.xlu1 %909 }
 0x5a1   :  { %1743 = vmatmul.mubr.msk.f32.vlgmr.msra.gmra.mrb[4].mxu0 %vm160_vm2, %v664_v4 }
 0x5a2   :  { %1751 = vmatpush3.xpose.msk.msra.mxu0 %vm160_vm2, %v832_v5  ;;  %1752 = vmatprep.mubr.msk.f32.mxu0 %vm1970_vm1, %v1969_v8 }
 0x5a3   :  { %1760 = vmatprep.subr.mxu0 %v1969_v8 }
 0x5a5   :  { %1753 = vmatmul.mubr.msk.f32.vlgmr.msra.gmra.mrb[6].mxu0 %vm160_vm2, %v830_v6 }
 0x5a6   :  { %1762 = vmatprep.mubr.msk.f32.mxu0 %vm1970_vm1, %v1969_v8 }
 0x5d0   :  { %v661_v9 = vpop.xlane.xlu1 %660 }
 0x5d1   :  { %1852 = vrcp.f32 %v661_v9 }
 0x5d4   :  { %v908_v14 = vpop.permute.xlu1 %907 }
 0x5db   :  { %v1853_v10 = vpop.eup %1852 }
 0x5dc   :  { %v665_v11 = vmul.f32 %v1853_v10, %v1849_v63 }
 0x5de   :  { %1748 = vmatmul.mubr.msk.f32.vlgmr.msra.gmra.mrb[10].mxu1 %vm160_vm2, %v665_v11 }
 0x5df   :  { %1756 = vmatpush3.xpose.msk.msra.mxu1 %vm160_vm2, %v910_v7  ;;  %1757 = vmatprep.mubr.msk.f32.mxu1 %vm1970_vm1, %v1969_v8 }
 0x5e0   :  { %1765 = vmatprep.subr.mxu1 %v1969_v8 }
 0x5e2   :  { %1758 = vmatmul.mubr.msk.f32.vlgmr.msra.gmra.mrb[12].mxu1 %vm160_vm2, %v908_v14 }
 0x5e3   :  { %1767 = vmatprep.mubr.msk.f32.mxu1 %vm1970_vm1, %v1969_v8 }
 0x674   :  { %v2154_v15 = vpop.f32.mrb[4].mxu0 }
 0x675   :  { %v1744_v16 = vpop.f32.mrb[5].mxu0 }
 0x676   :  { %v1513_v16 = vld [vmem:[#allocation8] sm:$0xff] }
 0x678   :  { %v903_v17 = vpop.f32.mrb[6].mxu0 }
 0x679   :  { %v1754_v18 = vpop.f32.mrb[7].mxu0  ;;  %v985_v19 = vsel %vm160_vm2, %v903_v17, -inf }
 0x67a   :  { %986 = vmax.xlane.f32.xlu0 %v985_v19 }
 0x6b1   :  { %v2157_v20 = vpop.f32.mrb[10].mxu1 }
 0x6b2   :  { %v1749_v21 = vpop.f32.mrb[11].mxu1 }
 0x6b3   :  { %v1516_v21 = vld [vmem:[#allocation8 + $0x18] sm:$0xff] }
 0x6b5   :  { %v981_v22 = vpop.f32.mrb[12].mxu1 }
 0x6b6   :  { %v1759_v23 = vpop.f32.mrb[13].mxu1  ;;  %v988_v24 = vsel %vm160_vm2, %v981_v22, -inf }
 0x6b7   :  { %989 = vmax.xlane.f32.xlu1 %v988_v24 }
 0x6c8   :  { %1007 = vrot.lane.b32.xlu1 %v2078_v12, %s1978_s13 }
 0x6cc   :  { %1172 = vrot.lane.b32.xlu1 %v2078_v12, %s1979_s14 }
 0x6d0   :  { %1250 = vrot.lane.b32.xlu1 %v2081_v13, %s1979_s14 }
 0x6d4   :  { %1248 = vrot.lane.b32.xlu1 %v2081_v13, %s1980_s15 }
 0x707   :  { %v987_v25 = vpop.xlane.xlu0 %986 }
 0x708   :  { %v991_v26 = vsub.f32 %v903_v17, %v987_v25 }
 0x70a   :  { %v993_v27 = vmul.f32 1.442695, %v991_v26 }
 0x70c   :  { %1854 = vpow2.f32 %v993_v27 }
 0x716   :  { %v1855_v28 = vpop.eup %1854 }
 0x717   :  { %v997_v29 = vsel %vm160_vm2, %v1855_v28, 0.0 }
 0x718   :  { %998 = vadd.xlane.f32.xlu0 %v997_v29  ;;  %v1652_v29 = vld [vmem:[%s2226_s4] ss:$0 sm:$0xff] }
 0x72e   :  { %1083 = vrot.lane.b32.xlu0 %v2081_v13, %s1978_s13 }
 0x744   :  { %v990_v30 = vpop.xlane.xlu1 %989 }
 0x745   :  { %v992_v31 = vsub.f32 %v981_v22, %v990_v30 }
 0x747   :  { %v995_v32 = vmul.f32 1.442695, %v992_v31 }
 0x748   :  { %v1008_v33 = vpop.permute.xlu1 %1007 }
 0x749   :  { %1856 = vpow2.f32 %v995_v32  ;;  %1761 = vmatpush3.msra.mxu0 %v1008_v33 }
 0x74a   :  { %1770 = vmatprep.subr.mxu0 %v1969_v8 }
 0x74c   :  { %v1173_v40 = vpop.permute.xlu1 %1172 }
 0x750   :  { %v1251_v44 = vpop.permute.xlu1 %1250 }
 0x753   :  { %v1857_v34 = vpop.eup %1856 }
 0x754   :  { %v1000_v35 = vsel %vm160_vm2, %v1857_v34, 0.0  ;;  %v1249_v46 = vpop.permute.xlu1 %1248 }
 0x755   :  { %1001 = vadd.xlane.f32.xlu0 %v1000_v35 }
 0x76b   :  { %1170 = vrot.lane.b32.xlu0 %v2078_v12, %s1980_s15 }
 0x7a5   :  { %v999_v36 = vpop.xlane.xlu0 %998 }
 0x7a6   :  { %1858 = vrcp.f32 %v999_v36 }
 0x7a9   :  { %v1084_v37 = vpop.permute.xlu0 %1083 }
 0x7aa   :  { %1766 = vmatpush3.msra.mxu1 %v1084_v37 }
 0x7ab   :  { %1775 = vmatprep.subr.mxu1 %v1969_v8 }
 0x7b0   :  { %v1859_v38 = vpop.eup %1858 }
 0x7b1   :  { %v1005_v39 = vmul.f32 %v1859_v38, %v1855_v28 }
 0x7b3   :  { %1763 = vmatmul.mubr.msk.f32.vlgmr.msra.gmra.mrb[8].mxu0 %vm160_vm2, %v1005_v39 }
 0x7b4   :  { %1771 = vmatpush3.xpose.msk.msra.mxu0 %vm160_vm2, %v1173_v40  ;;  %1772 = vmatprep.mubr.msk.f32.mxu0 %vm1970_vm1, %v1969_v8 }
 0x7b5   :  { %1780 = vmatprep.subr.mxu0 %v1969_v8 }
 0x7e2   :  { %v1002_v41 = vpop.xlane.xlu0 %1001 }
 0x7e3   :  { %1860 = vrcp.f32 %v1002_v41 }
 0x7e6   :  { %v1171_v42 = vpop.permute.xlu0 %1170 }
 0x7e7   :  { %1773 = vmatmul.mubr.msk.f32.vlgmr.msra.gmra.mrb[10].mxu0 %vm160_vm2, %v1171_v42 }
 0x7e8   :  { %1782 = vmatprep.mubr.msk.f32.mxu0 %vm1970_vm1, %v1969_v8 }
 0x7ed   :  { %v1861_v43 = vpop.eup %1860 }
 0x7ee   :  { %v1006_v45 = vmul.f32 %v1861_v43, %v1857_v34 }
 0x7f0   :  { %1768 = vmatmul.mubr.msk.f32.vlgmr.msra.gmra.mrb[14].mxu1 %vm160_vm2, %v1006_v45 }
 0x7f1   :  { %1776 = vmatpush3.xpose.msk.msra.mxu1 %vm160_vm2, %v1251_v44  ;;  %1777 = vmatprep.mubr.msk.f32.mxu1 %vm1970_vm1, %v1969_v8 }
 0x7f2   :  { %1785 = vmatprep.subr.mxu1 %v1969_v8 }
 0x7f4   :  { %1778 = vmatmul.mubr.msk.f32.vlgmr.msra.gmra.mrb[16].mxu1 %vm160_vm2, %v1249_v46 }
 0x7f5   :  { %1787 = vmatprep.mubr.msk.f32.mxu1 %vm1970_vm1, %v1969_v8 }
 0x886   :  { %v1079_v47 = vpop.f32.mrb[8].mxu0 }
 0x887   :  { %v1764_v48 = vpop.f32.mrb[9].mxu0 }
 0x8ba   :  { %v1244_v49 = vpop.f32.mrb[10].mxu0 }
 0x8bb   :  { %v1774_v50 = vpop.f32.mrb[11].mxu0  ;;  %v1326_v51 = vsel %vm160_vm2, %v1244_v49, -inf }
 0x8bc   :  { %1327 = vmax.xlane.f32.xlu0 %v1326_v51 }
 0x8c3   :  { %v1155_v52 = vpop.f32.mrb[14].mxu1 }
 0x8c4   :  { %v1769_v53 = vpop.f32.mrb[15].mxu1 }
 0x8c7   :  { %v1322_v54 = vpop.f32.mrb[16].mxu1 }
 0x8c8   :  { %v1779_v55 = vpop.f32.mrb[17].mxu1  ;;  %v1329_v56 = vsel %vm160_vm2, %v1322_v54, -inf }
 0x8c9   :  { %1330 = vmax.xlane.f32.xlu1 %v1329_v56 }
 0x8da   :  { %1348 = vrot.lane.b32.xlu1 %v2078_v12, %s1981_s16 }
 0x8de   :  { %820 = vrot.lane.b32.xlu1 %v2154_v15, %s1967_s6 }
 0x8e2   :  { %822 = vrot.lane.b32.xlu1 %v2157_v20, %s1967_s6  ;;  %v1515_v20 = vld [vmem:[#allocation8 + $0x10] sm:$0xff] }
 0x8e3   :  { %v1813_v22 = vpack.c.bf16 %v1516_v21, %v1515_v20 }
 0x8e6   :  { %1163 = vrot.lane.b32.xlu1 %v1155_v52, %s1982_s1 }
 0x949   :  { %v1328_v8 = vpop.xlane.xlu0 %1327 }
 0x94a   :  { %v1332_v57 = vsub.f32 %v1244_v49, %v1328_v8 }
 0x94c   :  { %v1334_v58 = vmul.f32 1.442695, %v1332_v57 }
 0x94e   :  { %1862 = vpow2.f32 %v1334_v58 }
 0x956   :  { %v1331_v59 = vpop.xlane.xlu1 %1330 }
 0x957   :  { %v1333_v60 = vsub.f32 %v1322_v54, %v1331_v59 }
 0x958   :  { %v1863_v61 = vpop.eup %1862 }
 0x959   :  { %v1336_v62 = vmul.f32 1.442695, %v1333_v60  ;;  %v1338_v63 = vsel %vm160_vm2, %v1863_v61, 0.0 }
 0x95a   :  { %v1349_v0 = vpop.permute.xlu1 %1348  ;;  %1339 = vadd.xlane.f32.xlu0 %v1338_v63 }
 0x95b   :  { %1864 = vpow2.f32 %v1336_v62  ;;  %1781 = vmatpush3.msra.mxu0 %v1349_v0 }
 0x95e   :  { %v821_v12 = vpop.permute.xlu1 %820 }
 0x95f   :  { %827 = vst.msk [vmem:[#allocation2] sm:$0xff] %vm826_vm3, %v821_v12 }
 0x962   :  { %v823_v1 = vpop.permute.xlu1 %822 }
 0x963   :  { %828 = vst.msk [vmem:[#allocation2 + $0x8] sm:$0xff] %vm826_vm3, %v823_v1 }
 0x965   :  { %v1865_v2 = vpop.eup %1864 }
 0x966   :  { %v1164_v3 = vpop.permute.xlu1 %1163  ;;  %v1341_v4 = vsel %vm160_vm2, %v1865_v2, 0.0 }
 0x967   :  { %1169 = vst.msk [vmem:[#allocation2 + $0x8] sm:$0xff] %vm1167_vm4, %v1164_v3  ;;  %1342 = vadd.xlane.f32.xlu0 %v1341_v4 }
 0x97d   :  { %1424 = vrot.lane.b32.xlu0 %v2081_v13, %s1981_s16  ;;  %v1514_v13 = vld [vmem:[#allocation8 + $0x8] sm:$0xff] }
 0x97e   :  { %v1809_v18 = vpack.c.bf16 %v1514_v13, %v1513_v16 }
 0x980   :  { %1810 = vmatprep.subr.bf16.mxu0 %v1809_v18 }
 0x981   :  { %1161 = vrot.lane.b32.xlu0 %v1079_v47, %s1982_s1 }
 0x9e7   :  { %v1340_v5 = vpop.xlane.xlu0 %1339 }
 0x9e8   :  { %1866 = vrcp.f32 %v1340_v5 }
 0x9f2   :  { %v1867_v6 = vpop.eup %1866 }
 0x9f3   :  { %v1346_v7 = vmul.f32 %v1867_v6, %v1863_v61 }
 0x9f4   :  { %v1343_v9 = vpop.xlane.xlu0 %1342 }
 0x9f5   :  { %1868 = vrcp.f32 %v1343_v9  ;;  %1783 = vmatmul.mubr.msk.f32.vlgmr.msra.gmra.mrb[12].mxu0 %vm160_vm2, %v1346_v7 }
 0x9f6   :  { %1812 = vmatpush3.bf16.msra.mxu0 %v1809_v18 }
 0x9f7   :  { %1814 = vmatprep.subr.bf16.mxu0 %v1813_v22 }
 0x9f8   :  { %v1425_v10 = vpop.permute.xlu0 %1424 }
 0x9f9   :  { %1786 = vmatpush3.msra.mxu1 %v1425_v10 }
 0x9fa   :  { %1816 = vmatpush3.bf16.msra.mxu0 %v1813_v22 }
 0x9fc   :  { %v1162_v11 = vpop.permute.xlu0 %1161 }
 0x9fd   :  { %1168 = vst.msk [vmem:[#allocation2] sm:$0xff] %vm1167_vm4, %v1162_v11 }
 0x9ff   :  { %v1869_v14 = vpop.eup %1868 }
 0xa00   :  { %v1347_v15 = vmul.f32 %v1869_v14, %v1865_v2 }
 0xa02   :  { %1788 = vmatmul.mubr.msk.f32.vlgmr.msra.gmra.mrb[18].mxu1 %vm160_vm2, %v1347_v15 }
 0xac8   :  { %v1420_v17 = vpop.f32.mrb[12].mxu0 }
 0xac9   :  { %1502 = vrot.lane.b32.xlu0 %v1420_v17, %s1983_s17  ;;  %v1784_v19 = vpop.f32.mrb[13].mxu0 }
 0xad5   :  { %v1496_v23 = vpop.f32.mrb[18].mxu1 }
 0xad6   :  { %1504 = vrot.lane.b32.xlu1 %v1496_v23, %s1983_s17  ;;  %v1789_v24 = vpop.f32.mrb[19].mxu1 }
 0xb3b   :  { %v1503_v25 = vpop.permute.xlu0 %1502 }
 0xb3c   :  { %1509 = vst.msk [vmem:[#allocation2] sm:$0xff] %vm1508_vm5, %v1503_v25 }
 0xb43   :  { %v1511_v26 = vld [vmem:[#allocation2] sm:$0xff] }
 0xb44   :  { %1798 = vmatprep.mubr.msk.f32.mxu0 %vm75_vm0, %v1511_v26 }
 0xb48   :  { %v1505_v27 = vpop.permute.xlu1 %1504 }
 0xb49   :  { %1510 = vst.msk [vmem:[#allocation2 + $0x8] sm:$0xff] %vm1508_vm5, %v1505_v27 }
 0xb50   :  { %v1512_v28 = vld [vmem:[#allocation2 + $0x8] sm:$0xff] }
 0xb51   :  { %1799 = vmatmul.mubr.msk.f32.vlgmr.msra.gmra.mrb[14].mxu0 %vm75_vm0, %v1512_v28 }
 0xc24   :  { %v1800_v30 = vpop.f32.mrb[14].mxu0 }
 0xc25   :  { %v1602_v31 = vadd.f32 %v1800_v30, %v1652_v29  ;;  %v1596_v32 = vpop.f32.mrb[15].mxu0 }
 0xc26   :  { %v1597_v33 = vadd.f32 %v1652_v29, %v1596_v32 }
 0xc27   :  { %1606 = vst.msk [vmem:[#allocation9 + $0x8] sm:$0xff] %vm75_vm0, %v1602_v31 }
 0xc28   :  { %1605 = vst.msk [vmem:[#allocation9] sm:$0xff] %vm75_vm0, %v1597_v33 }
 0xc29   :  { %1947 = shalt.err (!%p1944_p0)
}
 0xc2a   :  { %s1948_s25 = scalar_lea.hbm %s2227_s5, 256 }
 0xc2b   :  { %p1949_p1 = scmp.ne.s32.totalorder %s2227_s5, %s1948_s25  ;;  %p1952_p2 = scmp.lt.u32.totalorder %s1948_s25, %s2227_s5 }
 0xc2d   :  { %p1954_p3 = pnand %p1952_p2, %p1949_p1 }
 0xc2f   :  { %1957 = shalt.err (!%p1954_p3)
}
 0xc30   :  { %1618 = dma.vmem_to_hbm [thread:$0]  %s1613_s22, 256, %s2227_s5, [#allocation5], %s1966_s30, %s1966_s30, %s1967_s6  }
 0xc31   :  { %1962 = dma.done.wait [#allocation5], 256  }
 0xc32   :  { %1963 = vsyncadd [#allocation5], 4294967040 }
 0xc33   :  { %1622 = vsyncpa [#allocation4], 1 }
 0xc34   :  { %1623 = vsyncpa [#allocation7], 1 }
 0xc35   :  { %1624 = vsyncpa [#allocation5], 1 }

</bundles_post_ra>
